<compile_context>
chip_gen: v5e
topology: v5e:2x2
jax: 0.10.0
libtpu: 0.0.40
codegen_flags: <defaults>
</compile_context>

<pallas_src>
import jax
import jax.numpy as jnp
from jax.experimental import pallas as pl
from jax.experimental.pallas import tpu as pltpu


# ----------------------------------------------------------------------------
# Kernel: one even-indexed input row -> one output row (per grid point).
# ----------------------------------------------------------------------------
def _down_row_kernel(x_ref, w_ref, s_ref, t_ref, o_ref):
    # x_ref: (Cin,  W) f32   -- input row 2*h, gathered by the BlockSpec index_map
    # w_ref: (Cout, Cin) bf16 -- 1x1 conv weight
    # s_ref: (Cout, 1) f32   -- folded BN scale
    # t_ref: (Cout, 1) f32   -- folded (conv bias + BN) shift
    # o_ref: (Cout, W) f32   -- output row h (lane dim = W)
    x = x_ref[...].astype(jnp.bfloat16)                       # bf16 MXU operands
    acc = jnp.dot(w_ref[...], x,                              # (Cout, W)
                  preferred_element_type=jnp.float32)         # f32 accumulation
    acc = acc * s_ref[...] + t_ref[...]                       # (x@w+b)*scale + shift
    o_ref[...] = acc.astype(o_ref.dtype)


# ----------------------------------------------------------------------------
# Wrapper: Down.forward (NCHW in, NCHW out), conv bias + eval-mode BN folded.
# ----------------------------------------------------------------------------
def down_forward(x_nchw, weight, bias, bn_gamma, bn_beta, bn_mean, bn_var, *, eps=1e-5):
    N, Cin, H, W = x_nchw.shape
    Cout = weight.shape[0]
    Hs = (H + 1) // 2  # output height of a (1,1) conv with stride (2,1)

    # Fold conv bias + inference-mode BatchNorm into per-channel scale / shift.
    scale = bn_gamma / jnp.sqrt(bn_var + eps)                 # (Cout,)
    shift = bn_beta - bn_mean * scale + bias * scale          # (Cout,) bias folded in

    wmat = weight.reshape(Cout, Cin).astype(jnp.bfloat16)     # pre-cast once
    s_col = scale.reshape(Cout, 1).astype(jnp.float32)
    t_col = shift.reshape(Cout, 1).astype(jnp.float32)

    # Insert a dummy size-1 dim before W so the last two block dims always equal
    # the full array dims (satisfies the (8,128)/full-dim block rule), while the
    # H axis — now third-minor — can be indexed row-by-row (2*h) by the index_map.
    x5 = x_nchw.reshape(N, Cin, H, 1, W)                      # free reshape

    out5 = pl.pallas_call(
        _down_row_kernel,
        out_shape=jax.ShapeDtypeStruct((N, Cout, Hs, 1, W), jnp.float32),
        grid=(N, Hs),
        in_specs=[
            # x block: (1,Cin,1,1,W) -> kernel sees (Cin, W); row 2*h fuses the
            # stride-2 subsample directly into the DMA.
            pl.BlockSpec(
                (pl.Squeezed(), Cin, pl.Squeezed(), pl.Squeezed(), W),
                lambda n, h: (n, 0, 2 * h, 0, 0)),
            # weight / scale / shift: whole-array, grid-invariant (stay resident).
            pl.BlockSpec((Cout, Cin), lambda n, h: (0, 0)),
            pl.BlockSpec((Cout, 1), lambda n, h: (0, 0)),
            pl.BlockSpec((Cout, 1), lambda n, h: (0, 0)),
        ],
        out_specs=pl.BlockSpec(
            (pl.Squeezed(), Cout, pl.Squeezed(), pl.Squeezed(), W),
            lambda n, h: (n, 0, h, 0, 0)),
        compiler_params=pltpu.CompilerParams(
            dimension_semantics=("parallel", "parallel"),
            vmem_limit_bytes=32 * 1024 * 1024),
    )(x5, wmat, s_col, t_col)

    return out5.reshape(N, Cout, Hs, W)                       # NCHW output


# ----------------------------------------------------------------------------
# Pure-JAX reference (f32) for a correctness check.
# ----------------------------------------------------------------------------
def down_reference(x, weight, bias, gamma, beta, mean, var, eps=1e-5):
    Cout, Cin = weight.shape[0], weight.shape[1]
    xs = x[:, :, ::2, :]                                      # (1,1) kernel, stride (2,1)
    y = jnp.einsum("nchw,oc->nohw", xs, weight.reshape(Cout, Cin))
    y = y + bias[None, :, None, None]
    scale = gamma / jnp.sqrt(var + eps)
    shift = beta - mean * scale
    return y * scale[None, :, None, None] + shift[None, :, None, None]


# ----------------------------------------------------------------------------
if __name__ == "__main__":
    key = jax.random.PRNGKey(0)
    k1, k2, k3, k4, k5, k6, k7 = jax.random.split(key, 7)

    N, Cin, H, W = 2, 4, 16, 16          # small NCHW input, like the PyTorch module
    Cout = 32                            # Down(in_channels=4, out_channels=32)

    x = jax.random.normal(k1, (N, Cin, H, W), jnp.float32)
    weight = 0.1 * jax.random.normal(k2, (Cout, Cin, 1, 1), jnp.float32)
    bias = 0.1 * jax.random.normal(k3, (Cout,), jnp.float32)
    gamma = 1.0 + 0.1 * jax.random.normal(k4, (Cout,), jnp.float32)
    beta = 0.1 * jax.random.normal(k5, (Cout,), jnp.float32)
    mean = 0.1 * jax.random.normal(k6, (Cout,), jnp.float32)
    var = jax.random.uniform(k7, (Cout,), jnp.float32, 0.5, 1.5)

    fwd = jax.jit(down_forward)
    y = jax.block_until_ready(fwd(x, weight, bias, gamma, beta, mean, var))

    assert y.shape == (N, Cout, (H + 1) // 2, W), y.shape
    assert bool(jnp.all(jnp.isfinite(y)))

    y_ref = down_reference(x, weight, bias, gamma, beta, mean, var)
    max_err = float(jnp.max(jnp.abs(y - y_ref)))
    assert max_err < 5e-2, max_err        # bf16 operands, f32 accumulation

    print("KERNEL_OK")
</pallas_src>

<mosaic_0001>
module attributes {stable_mosaic.version = 11 : i64} {
  func.func @_down_row_kernel(%arg0: i32, %arg1: i32, %arg2: memref<1x4x1x1x16xf32, #tpu.memory_space<vmem>>, %arg3: memref<32x4xbf16, #tpu.memory_space<vmem>>, %arg4: memref<32x1xf32, #tpu.memory_space<vmem>>, %arg5: memref<32x1xf32, #tpu.memory_space<vmem>>, %arg6: memref<1x32x1x1x16xf32, #tpu.memory_space<vmem>>) attributes {dimension_semantics = [#tpu.dimension_semantics<parallel>, #tpu.dimension_semantics<parallel>], iteration_bounds = array<i64: 2, 8>, scalar_prefetch = 0 : i64, scratch_operands = 0 : i64, tpu.core_type = #tpu.core_type<tc>, window_params = [{transform_indices = @transform_0, window_bounds = array<i64: 1, 4, 1, 1, 16>}, {pipeline_mode = #tpu.pipeline_mode<synchronous>, transform_indices = @transform_1, window_bounds = array<i64: 32, 4>}, {pipeline_mode = #tpu.pipeline_mode<synchronous>, transform_indices = @transform_2, window_bounds = array<i64: 32, 1>}, {pipeline_mode = #tpu.pipeline_mode<synchronous>, transform_indices = @transform_3, window_bounds = array<i64: 32, 1>}, {transform_indices = @transform_4, window_bounds = array<i64: 1, 32, 1, 1, 16>}]} {
    %c0 = arith.constant 0 : index
    %c0_0 = arith.constant 0 : index
    %c0_1 = arith.constant 0 : index
    %c0_2 = arith.constant 0 : index
    %c0_3 = arith.constant 0 : index
    %0 = vector.load %arg2[%c0, %c0_0, %c0_1, %c0_2, %c0_3] : memref<1x4x1x1x16xf32, #tpu.memory_space<vmem>>, vector<1x4x1x1x16xf32>
    %1 = vector.shape_cast %0 : vector<1x4x1x1x16xf32> to vector<4x16xf32>
    %2 = arith.truncf %1 : vector<4x16xf32> to vector<4x16xbf16>
    %c0_4 = arith.constant 0 : index
    %c0_5 = arith.constant 0 : index
    %3 = vector.load %arg3[%c0_4, %c0_5] : memref<32x4xbf16, #tpu.memory_space<vmem>>, vector<32x4xbf16>
    %cst = arith.constant dense<0.000000e+00> : vector<32x16xf32>
    %4 = tpu.matmul %3, %2, %cst {dimension_numbers = #tpu.dot_dimension_numbers<[1], [0], [0], [1], [0, 0, 1, 1], [], []>} : vector<32x4xbf16>, vector<4x16xbf16>, vector<32x16xf32> -> vector<32x16xf32>
    %c0_6 = arith.constant 0 : index
    %c0_7 = arith.constant 0 : index
    %5 = vector.load %arg4[%c0_6, %c0_7] : memref<32x1xf32, #tpu.memory_space<vmem>>, vector<32x1xf32>
    %6 = vector.broadcast %5 : vector<32x1xf32> to vector<32x16xf32>
    %7 = arith.mulf %4, %6 : vector<32x16xf32>
    %c0_8 = arith.constant 0 : index
    %c0_9 = arith.constant 0 : index
    %8 = vector.load %arg5[%c0_8, %c0_9] : memref<32x1xf32, #tpu.memory_space<vmem>>, vector<32x1xf32>
    %9 = vector.broadcast %8 : vector<32x1xf32> to vector<32x16xf32>
    %10 = arith.addf %7, %9 : vector<32x16xf32>
    %c0_10 = arith.constant 0 : index
    %c0_11 = arith.constant 0 : index
    %c0_12 = arith.constant 0 : index
    %c0_13 = arith.constant 0 : index
    %c0_14 = arith.constant 0 : index
    %11 = vector.load %arg6[%c0_10, %c0_11, %c0_12, %c0_13, %c0_14] : memref<1x32x1x1x16xf32, #tpu.memory_space<vmem>>, vector<1x32x1x1x16xf32>
    %12 = vector.shape_cast %11 : vector<1x32x1x1x16xf32> to vector<32x16xf32>
    %13 = vector.shape_cast %10 : vector<32x16xf32> to vector<1x32x1x1x16xf32>
    tpu.vector_store %arg6[%c0_10, %c0_11, %c0_12, %c0_13, %c0_14], %13 {strides = array<i32>} : memref<1x32x1x1x16xf32, #tpu.memory_space<vmem>>, vector<1x32x1x1x16xf32>,
    return
  }
  func.func @transform_0(%arg0: i32, %arg1: i32) -> (i32, i32, i32, i32, i32) {
    %c2_i32 = arith.constant 2 : i32
    %0 = arith.muli %c2_i32, %arg1 : i32
    %c0_i32 = arith.constant 0 : i32
    %c0_i32_0 = arith.constant 0 : i32
    %c0_i32_1 = arith.constant 0 : i32
    %c0_i32_2 = arith.constant 0 : i32
    return %arg0, %c0_i32, %0, %c0_i32_0, %c0_i32_1 : i32, i32, i32, i32, i32
  }
  func.func @transform_1(%arg0: i32, %arg1: i32) -> (i32, i32) {
    %c0_i32 = arith.constant 0 : i32
    %c0_i32_0 = arith.constant 0 : i32
    %c0_i32_1 = arith.constant 0 : i32
    return %c0_i32, %c0_i32_0 : i32, i32
  }
  func.func @transform_2(%arg0: i32, %arg1: i32) -> (i32, i32) {
    %c0_i32 = arith.constant 0 : i32
    %c0_i32_0 = arith.constant 0 : i32
    %c0_i32_1 = arith.constant 0 : i32
    return %c0_i32, %c0_i32_0 : i32, i32
  }
  func.func @transform_3(%arg0: i32, %arg1: i32) -> (i32, i32) {
    %c0_i32 = arith.constant 0 : i32
    %c0_i32_0 = arith.constant 0 : i32
    %c0_i32_1 = arith.constant 0 : i32
    return %c0_i32, %c0_i32_0 : i32, i32
  }
  func.func @transform_4(%arg0: i32, %arg1: i32) -> (i32, i32, i32, i32, i32) {
    %c0_i32 = arith.constant 0 : i32
    %c0_i32_0 = arith.constant 0 : i32
    %c0_i32_1 = arith.constant 0 : i32
    %c0_i32_2 = arith.constant 0 : i32
    return %arg0, %c0_i32, %arg1, %c0_i32_0, %c0_i32_1 : i32, i32, i32, i32, i32
  }
}

</mosaic_0001>

<bundles_post_ra>
// kernel: down_forward.1
= control target key start
LH: loop header
LB: loop body
LE: loop exit
PB: predicated region body
PF: predicated region fallthrough
CT: control target
= control target key end

     0   :  { %9 = vsyncpa [#allocation3], 0  ;;  %s1278_s0 = inlined_call_operand.hbm [shape: f32[2,4,16,1,16], index: 0, kind: input, shape index: {}]   ;;  %s1279_s1 = inlined_call_operand.vmem [shape: bf16[32,4], index: 1, kind: input, shape index: {}]   ;;  %s1280_s2 = inlined_call_operand.vmem [shape: f32[32,1], index: 2, kind: input, shape index: {}]   ;;  %s1281_s3 = inlined_call_operand.vmem [shape: f32[32,1], index: 3, kind: input, shape index: {}]   ;;  %s1282_s4 = inlined_call_operand.vmem [shape: f32[2,32,8,1,16], index: 4, kind: output, shape index: {}]  }
   0x1   :  { %11 = vsyncpa [#allocation3 + $0x1], 0  ;;  %s971_s15 = smov 0   ;;  %s973_s16 = smov 0  }
   0x2   :  { %s975_s17 = smov 0   ;;  %s977_s18 = smov 0  }
   0x3   :  { %s979_s19 = smov 0   ;;  %s981_s20 = smov 0  }
   0x4   :  { %s983_s21 = smov 0   ;;  %s985_s22 = smov 0  }
   0x5   :  { %s987_s23 = smov 0   ;;  %s989_s24 = smov 0  }
   0x6 LB: > { %1286 = sst [smem:[#allocation6_spill]] %s920_s19  ;;  %s705_s25 = sadd.s32 4294967295, %s940_s24   ;;  %s940_s24 = sphi %s989_s24, %s17_s24   ;;  %s936_s23 = sphi %s987_s23, %s1306_s23   ;;  %s932_s22 = sphi %s985_s22, %s1305_s22   ;;  %s928_s21 = sphi %s983_s21, %s1304_s21   ;;  %s924_s20 = sphi %s981_s20, %s1303_s20   ;;  %s920_s19 = sphi %s979_s19, %s1296_s19   ;;  %s916_s18 = sphi %s977_s18, %s1302_s18   ;;  %s912_s17 = sphi %s975_s17, %s1301_s17   ;;  %s908_s16 = sphi %s973_s16, %s1300_s16   ;;  %s904_s15 = sphi %s971_s15, %s1299_s15  }
   0x7   : > { %s26_s26 = sadd.s32 1, %s932_s22  ;;  %s29_s27 = sadd.s32 1, %s936_s23 }
   0x8   : > { %p27_p0 = scmp.ge.s32.totalorder %s26_s26, 8  ;;  %s707_s28 = sshll.u32 %s932_s22, 1 }
   0x9   : > { %s40_s29 = sadd.s32 1, %s920_s19  ;;  %p47_p1 = scmp.ne.s32.totalorder %s920_s19, %s916_s18 }
   0xa   : > { %s1308_s26 = smov (%p27_p0, %s26_s26), 0  ;;  %s1310_s27 = smov (!%p27_p0, %s29_s27), %s936_s23 }
   0xb   : > { %1287 = sst [smem:[#allocation7_spill]] %s1308_s26  ;;  %s708_s30 = sshll.u32 %s1308_s26, 1 }
   0xc   : > { %p31_p2 = scmp.ge.s32.totalorder %s1310_s27, 2  ;;  %s36_s5 = ssub.s32 %s707_s28, %s708_s30 }
   0xd   : > { %p48_p3 = scmp.eq.s32.totalorder %s940_s24, 0  ;;  %p53_p4 = scmp.ne.s32.totalorder %s916_s18, %s912_s17 }
   0xe   : > { %s1312_s27 = smov (%p31_p2, %s1310_s27), 0  ;;  %p54_p6 = scmp.eq.s32.totalorder %s705_s25, 0 }
   0xf   : > { %1288 = sst [smem:[#allocation8_spill]] %s1312_s27  ;;  %p1036_p5 = por %p48_p3, %p47_p1 }
  0x10   : > { %s35_s7 = ssub.s32 %s936_s23, %s1312_s27  ;;  %s127_s8 = ssub.s32 %s932_s22, %s1308_s26 }
  0x11   : > { %s37_s9 = sor.u32 %s36_s5, %s35_s7  ;;  %p1044_p7 = por %p54_p6, %p53_p4 }
  0x12   : > { %p38_p8 = scmp.eq.s32.totalorder %s37_s9, 0  ;;  %s128_s11 = sor.u32 %s127_s8, %s35_s7 }
  0x13   : > { %p129_p9 = scmp.eq.s32.totalorder %s128_s11, 0  ;;  %s131_s12 = sadd.s32 1, %s908_s16 }
  0x14   : > { %s1050_s13 = scalar_select %p38_p8, %s920_s19, %s40_s29  }
  0x15   : > { %s1053_s14 = scalar_select %p129_p9, %s908_s16, %s131_s12  }
  0x16   : > { %1291 = sst [smem:[#allocation9_spill]] %s1050_s13  ;;  %p141_p10 = scmp.ne.s32.totalorder %s908_s16, %s904_s15 }
  0x17   : > { %1292 = sst [smem:[#allocation10_spill]] %s1053_s14  ;;  %p142_p11 = scmp.eq.s32.totalorder %s705_s25, 15 }
  0x18   : > { %p740_p12 = scmp.lt.s32.totalorder %s940_s24, 16  ;;  %s177_s30 = sand.u32 1, %s920_s19  }
  0x19   : > { %p1058_p13 = por %p142_p11, %p141_p10  ;;  %s711_s5 = sshll.u32 %s177_s30, 2 }
  0x1a   : > { %s713_s9 = sshll.u32 %s936_s23, 6  ;;  %s181_s8 = scalar_lea.vmem [#allocation2], %s711_s5 }
  0x1b   : > { %s186_s7 = sadd.s32 %s713_s9, %s707_s28  ;;  %s190_s11 = sshll.u32 %s181_s8, 4  ;;  %s191_s11 = int_to_ptr.vmem [resolvable:$true] %s190_s11 }
  0x1c   : > { %s187_s12 = scalar_lea.hbm %s1278_s0, %s186_s7  ;;  %p737_p0 = pnand %p740_p12, %p1036_p5 }
  0x1d   : > { %s188_s26 = sshll.u32 %s187_s12, 4  ;;  %p714_p1 = scmp.ge.s32.totalorder %s940_s24, 1  ;;  %s189_s26 = int_to_ptr.hbm [resolvable:$true] %s188_s26 }
  0x1e   : > { %s178_s25 = scalar_lea.sflag [#allocation3], %s177_s30  ;;  %s942_s13 = smov 256  }
  0x1f   : > { %s943_s19 = smov 16   ;;  %s944_s14 = smov 1  }
  0x20   : > { %739 = dma.hbm_to_vmem [thread:$0]  (!%p737_p0), %s189_s26, 64, %s191_s11, %s178_s25, %s942_s13, %s943_s19, %s944_s14  }
  0x21   : > { %p198_p2 = scmp.lt.s32.totalorder %s940_s24, 17 }
  0x23   : > { %p199_p3 = pnand %p714_p1, %p198_p2 }
  0x24   : > { %s204_s28 = sand.u32 (!%p199_p3), 1, %s916_s18  }
  0x25   : > { %202 = sbr.rel (%p199_p3) target bundleno = 254 (0xfe), region = 36  ;;  %s715_s5 = sshll.u32 (!%p199_p3), %s204_s28, 2 }
  0x26   : > { %s205_s27 = scalar_lea.sflag (!%p199_p3), [#allocation3], %s204_s28  ;;  %s208_s9 = scalar_lea.vmem (!%p199_p3), [#allocation2], %s715_s5 }
  0x2a   : > { %899 = dma.done.wait (%p1044_p7), %s205_s27, 64  }
  0x2b   : > { %901 = vsyncadd (%p1044_p7), %s205_s27, 4294967232  ;;  %v945_v0 = vmov 0   ;;  %v307_v1 = vld [vmem:[%s1280_s2 + $0x10] sm:$0xff]  ;;  %v305_v2 = vld [vmem:[%s1280_s2] sm:$0xff]  ;;  %vm266_vm0 = vcmask 1041409   ;;  %vm269_vm1 = vcmask 1042434  }
  0x2c   : > { %826 = vset.pattern.permute.xlu1 %v945_v0  ;;  %825 = vset.pattern.permute.xlu0 %v945_v0  ;;  %v235_v3 = vld [vmem:[%s208_s9] sm:$0x1]  ;;  %v236_v4 = vld [vmem:[%s208_s9 + $0x1] sm:$0x1]  ;;  %v237_v5 = vld [vmem:[%s208_s9 + $0x2] sm:$0x1] }
  0x2d   : > { %827 = vset.pattern.permute.xlu2 %v945_v0  ;;  %321 = vperm.xlu1 %826, %v307_v1   ;;  %v238_v6 = vld [vmem:[%s208_s9 + $0x3] sm:$0x1]  ;;  %v239_v7 = vpack.c.bf16 %v235_v3, %v235_v3  ;;  %v240_v8 = vpack.c.bf16 %v236_v4, %v236_v4  ;;  %v241_v9 = vpack.c.bf16 %v237_v5, %v237_v5  ;;  %v308_v16 = vld [vmem:[%s1280_s2 + $0x18] sm:$0xff]  ;;  %v306_v17 = vld [vmem:[%s1280_s2 + $0x8] sm:$0xff]  ;;  %vm272_vm2 = vcmask 1043459   ;;  %s230_s13 = sand.u32 1, %s904_s15  }
  0x2e   : > { %311 = vperm.xlu0 %825, %v305_v2   ;;  %v242_v10 = vpack.c.bf16 %v238_v6, %v238_v6  ;;  %v333_v13 = vld [vmem:[%s1281_s3] sm:$0xff]  ;;  %vm282_vm3 = vcmask 1041408   ;;  %v334_v24 = vld [vmem:[%s1281_s3 + $0x8] sm:$0xff]  ;;  %vm275_vm4 = vcmask 31744   ;;  %v336_v29 = vld [vmem:[%s1281_s3 + $0x18] sm:$0xff]  ;;  %s716_s10 = sshll.u32 %s230_s13, 5 }
  0x2f   : > { %v261_v11 = vunpack.c.l.b16 %v239_v7  ;;  %v262_v12 = vunpack.c.l.b16 %v240_v8  ;;  %v263_v14 = vunpack.c.l.b16 %v241_v9  ;;  %339 = vperm.xlu2 %827, %v333_v13   ;;  %v731_v27 = vld [vmem:[%s1279_s1] sm:$0xff]  ;;  %v732_v28 = vld [vmem:[%s1279_s1 + $0x8] sm:$0xff]  ;;  %v335_v30 = vld [vmem:[%s1281_s3 + $0x10] sm:$0xff]  ;;  %vm421_vm5 = vcmask 122880   ;;  %s1109_s14 = scalar_lea.vmem [#allocation4], %s716_s10  ;;  %s728_s15 = sshll.u32 (%p1058_p13), %s928_s21, 8 }
  0x30   : > { %v264_v15 = vunpack.c.l.b16 %v242_v10  ;;  %s462_s30 = sadd.s32 (%p1058_p13), %s924_s20, %s728_s15 }
  0x31   : > { %v265_v18 = vrot.slane %v262_v12, 7  ;;  %v268_v19 = vrot.slane %v263_v14, 6  ;;  %s1184_s17 = scalar_lea.vmem (%p1058_p13), %s1282_s4, %s462_s30 }
  0x32   : > { %v271_v20 = vrot.slane %v264_v15, 5 }
  0x33   : > { %v267_v21 = vsel %vm266_vm0, %v265_v18, %v261_v11 }
  0x34   : > { %v270_v22 = vsel %vm269_vm1, %v268_v19, %v267_v21 }
  0x35   : > { %326 = vperm.xlu1 %826, %v308_v16   ;;  %v273_v23 = vsel %vm272_vm2, %v271_v20, %v270_v22 }
  0x36   : > { %316 = vperm.xlu0 %825, %v306_v17   ;;  %v274_v25 = vpack.c.b16 %v273_v23, %v273_v23 }
  0x37   : > { %344 = vperm.xlu2 %827, %v334_v24  }
  0x38   : > { %v284_v26 = vsel %vm282_vm3, %v274_v25, 0 }
  0x39   : > { %293 = vmatpush.bf16.msra.mxu0 %v284_v26  ;;  %733 = vmatpush.bf16.msra.mxu1 %v284_v26 }
  0x3c   : > { %725 = vmatmul.msk.bf16.vlgmr.msra.gmra.mxu0 %vm275_vm4, %v731_v27  ;;  %726 = vmatmul.msk.bf16.vlgmr.msra.gmra.mxu1 %vm275_vm4, %v732_v28 }
  0x3d   : > { %354 = vperm.xlu1 %826, %v336_v29  }
  0x3e   : > { %349 = vperm.xlu0 %825, %v335_v30  }
  0x89   : > { %v340_v38 = vpop.permute.xlu2 %339 }
  0x91   : > { %v345_v56 = vpop.permute.xlu2 %344 }
  0x9f   : > { %v322_v33 = vpop.permute.xlu1 %321 }
  0xa0   : > { %v312_v31 = vpop.permute.xlu0 %311 }
  0xa7   : > { %v327_v52 = vpop.permute.xlu1 %326 }
  0xa8   : > { %v317_v32 = vpop.permute.xlu0 %316 }
  0xaf   : > { %v355_v2 = vpop.permute.xlu1 %354 }
  0xb0   : > { %v350_v39 = vpop.permute.xlu0 %349 }
  0xb9   : > { %v295_v34 = vpop.f32.mrf.mxu0  ;;  %v300_v35 = vpop.f32.mrf.mxu1 }
  0xba   : > { %v329_v36 = vmul.f32 %v312_v31, %v295_v34  ;;  %v331_v37 = vmul.f32 %v322_v33, %v300_v35 }
  0xbc   : > { %v357_v40 = vadd.f32 %v340_v38, %v329_v36  ;;  %v359_v41 = vadd.f32 %v350_v39, %v331_v37 }
  0xbe   : > { %v365_v42 = vrot.slane %v357_v40, 1  ;;  %v366_v43 = vrot.slane %v357_v40, 2  ;;  %v367_v44 = vrot.slane %v357_v40, 3  ;;  %422 = vst.msk [vmem:[%s1109_s14] sm:$0x1] %vm421_vm5, %v357_v40  ;;  %v368_v45 = vrot.slane %v357_v40, 4 }
  0xbf   : > { %438 = vst.msk [vmem:[%s1109_s14 + $0x10] sm:$0x1] %vm421_vm5, %v359_v41  ;;  %v369_v46 = vrot.slane %v357_v40, 5  ;;  %v370_v47 = vrot.slane %v357_v40, 6  ;;  %v371_v49 = vrot.slane %v357_v40, 7  ;;  %v379_v50 = vrot.slane %v359_v41, 1 }
  0xc0   : > { %423 = vst.msk [vmem:[%s1109_s14 + $0x1] sm:$0x1] %vm421_vm5, %v365_v42  ;;  %v380_v53 = vrot.slane %v359_v41, 2  ;;  %v381_v54 = vrot.slane %v359_v41, 3  ;;  %v382_v55 = vrot.slane %v359_v41, 4  ;;  %v383_v57 = vrot.slane %v359_v41, 5 }
  0xc1   : > { %424 = vst.msk [vmem:[%s1109_s14 + $0x2] sm:$0x1] %vm421_vm5, %v366_v43  ;;  %v297_v48 = vpop.f32.mrf.mxu0  ;;  %v384_v59 = vrot.slane %v359_v41, 6  ;;  %v302_v60 = vpop.f32.mrf.mxu1  ;;  %v385_v61 = vrot.slane %v359_v41, 7 }
  0xc2   : > { %425 = vst.msk [vmem:[%s1109_s14 + $0x3] sm:$0x1] %vm421_vm5, %v367_v44  ;;  %v330_v51 = vmul.f32 %v317_v32, %v297_v48  ;;  %v332_v63 = vmul.f32 %v327_v52, %v302_v60 }
  0xc3   : > { %426 = vst.msk [vmem:[%s1109_s14 + $0x4] sm:$0x1] %vm421_vm5, %v368_v45 }
  0xc4   : > { %427 = vst.msk [vmem:[%s1109_s14 + $0x5] sm:$0x1] %vm421_vm5, %v369_v46  ;;  %v358_v58 = vadd.f32 %v345_v56, %v330_v51  ;;  %v360_v5 = vadd.f32 %v355_v2, %v332_v63 }
  0xc5   : > { %428 = vst.msk [vmem:[%s1109_s14 + $0x6] sm:$0x1] %vm421_vm5, %v370_v47  ;;  %v480_v15 = vld [vmem:[%s1109_s14] sm:$0x1] (%p1058_p13) }
  0xc6   : > { %429 = vst.msk [vmem:[%s1109_s14 + $0x7] sm:$0x1] %vm421_vm5, %v371_v49  ;;  %v372_v62 = vrot.slane %v358_v58, 1  ;;  %v373_v0 = vrot.slane %v358_v58, 2  ;;  %v374_v1 = vrot.slane %v358_v58, 3  ;;  %v375_v3 = vrot.slane %v358_v58, 4 }
  0xc7   : > { %439 = vst.msk [vmem:[%s1109_s14 + $0x11] sm:$0x1] %vm421_vm5, %v379_v50  ;;  %v376_v4 = vrot.slane %v358_v58, 5  ;;  %v377_v6 = vrot.slane %v358_v58, 6  ;;  %v378_v7 = vrot.slane %v358_v58, 7  ;;  %v386_v8 = vrot.slane %v360_v5, 1 }
  0xc8   : > { %440 = vst.msk [vmem:[%s1109_s14 + $0x12] sm:$0x1] %vm421_vm5, %v380_v53  ;;  %v387_v9 = vrot.slane %v360_v5, 2  ;;  %v388_v10 = vrot.slane %v360_v5, 3  ;;  %v389_v11 = vrot.slane %v360_v5, 4  ;;  %v390_v12 = vrot.slane %v360_v5, 5 }
  0xc9   : > { %441 = vst.msk [vmem:[%s1109_s14 + $0x13] sm:$0x1] %vm421_vm5, %v381_v54  ;;  %v391_v13 = vrot.slane %v360_v5, 6  ;;  %v392_v14 = vrot.slane %v360_v5, 7  ;;  %v482_v16 = vld [vmem:[%s1109_s14 + $0x1] sm:$0x1] (%p1058_p13) }
  0xca   : > { %442 = vst.msk [vmem:[%s1109_s14 + $0x14] sm:$0x1] %vm421_vm5, %v382_v55  ;;  %v484_v17 = vld [vmem:[%s1109_s14 + $0x2] sm:$0x1] (%p1058_p13)  ;;  %v486_v18 = vld [vmem:[%s1109_s14 + $0x3] sm:$0x1] (%p1058_p13) }
  0xcb   : > { %443 = vst.msk [vmem:[%s1109_s14 + $0x15] sm:$0x1] %vm421_vm5, %v383_v57  ;;  %v488_v19 = vld [vmem:[%s1109_s14 + $0x4] sm:$0x1] (%p1058_p13)  ;;  %v490_v20 = vld [vmem:[%s1109_s14 + $0x5] sm:$0x1] (%p1058_p13) }
  0xcc   : > { %444 = vst.msk [vmem:[%s1109_s14 + $0x16] sm:$0x1] %vm421_vm5, %v384_v59  ;;  %v492_v21 = vld [vmem:[%s1109_s14 + $0x6] sm:$0x1] (%p1058_p13)  ;;  %v512_v31 = vld [vmem:[%s1109_s14 + $0x10] sm:$0x1] (%p1058_p13) }
  0xcd   : > { %445 = vst.msk [vmem:[%s1109_s14 + $0x17] sm:$0x1] %vm421_vm5, %v385_v61  ;;  %v494_v22 = vld [vmem:[%s1109_s14 + $0x7] sm:$0x1] (%p1058_p13) }
  0xce   : > { %430 = vst.msk [vmem:[%s1109_s14 + $0x8] sm:$0x1] %vm421_vm5, %v358_v58  ;;  %v514_v32 = vld [vmem:[%s1109_s14 + $0x11] sm:$0x1] (%p1058_p13) }
  0xcf   : > { %431 = vst.msk [vmem:[%s1109_s14 + $0x9] sm:$0x1] %vm421_vm5, %v372_v62  ;;  %v516_v33 = vld [vmem:[%s1109_s14 + $0x12] sm:$0x1] (%p1058_p13) }
  0xd0   : > { %432 = vst.msk [vmem:[%s1109_s14 + $0xa] sm:$0x1] %vm421_vm5, %v373_v0  ;;  %v518_v34 = vld [vmem:[%s1109_s14 + $0x13] sm:$0x1] (%p1058_p13) }
  0xd1   : > { %433 = vst.msk [vmem:[%s1109_s14 + $0xb] sm:$0x1] %vm421_vm5, %v374_v1  ;;  %v520_v35 = vld [vmem:[%s1109_s14 + $0x14] sm:$0x1] (%p1058_p13) }
  0xd2   : > { %434 = vst.msk [vmem:[%s1109_s14 + $0xc] sm:$0x1] %vm421_vm5, %v375_v3  ;;  %v522_v36 = vld [vmem:[%s1109_s14 + $0x15] sm:$0x1] (%p1058_p13) }
  0xd3   : > { %435 = vst.msk [vmem:[%s1109_s14 + $0xd] sm:$0x1] %vm421_vm5, %v376_v4  ;;  %v524_v37 = vld [vmem:[%s1109_s14 + $0x16] sm:$0x1] (%p1058_p13) }
  0xd4   : > { %436 = vst.msk [vmem:[%s1109_s14 + $0xe] sm:$0x1] %vm421_vm5, %v377_v6  ;;  %v526_v38 = vld [vmem:[%s1109_s14 + $0x17] sm:$0x1] (%p1058_p13) }
  0xd5   : > { %437 = vst.msk [vmem:[%s1109_s14 + $0xf] sm:$0x1] %vm421_vm5, %v378_v7  ;;  %v496_v23 = vld [vmem:[%s1109_s14 + $0x8] sm:$0x1] (%p1058_p13) }
  0xd6   : > { %446 = vst.msk [vmem:[%s1109_s14 + $0x18] sm:$0x1] %vm421_vm5, %v360_v5  ;;  %v498_v24 = vld [vmem:[%s1109_s14 + $0x9] sm:$0x1] (%p1058_p13) }
  0xd7   : > { %447 = vst.msk [vmem:[%s1109_s14 + $0x19] sm:$0x1] %vm421_vm5, %v386_v8  ;;  %v500_v25 = vld [vmem:[%s1109_s14 + $0xa] sm:$0x1] (%p1058_p13) }
  0xd8   : > { %448 = vst.msk [vmem:[%s1109_s14 + $0x1a] sm:$0x1] %vm421_vm5, %v387_v9  ;;  %v502_v26 = vld [vmem:[%s1109_s14 + $0xb] sm:$0x1] (%p1058_p13) }
  0xd9   : > { %449 = vst.msk [vmem:[%s1109_s14 + $0x1b] sm:$0x1] %vm421_vm5, %v388_v10  ;;  %460 = sbr.rel (!%p1058_p13) target bundleno = 254 (0xfe), region = 44  ;;  %v504_v27 = vld [vmem:[%s1109_s14 + $0xc] sm:$0x1] (%p1058_p13) }
  0xda   : > { %450 = vst.msk [vmem:[%s1109_s14 + $0x1c] sm:$0x1] %vm421_vm5, %v389_v11  ;;  %v506_v28 = vld [vmem:[%s1109_s14 + $0xd] sm:$0x1] (%p1058_p13) }
  0xdb   : > { %451 = vst.msk [vmem:[%s1109_s14 + $0x1d] sm:$0x1] %vm421_vm5, %v390_v12  ;;  %v508_v29 = vld [vmem:[%s1109_s14 + $0xe] sm:$0x1] (%p1058_p13) }
  0xdc   : > { %452 = vst.msk [vmem:[%s1109_s14 + $0x1e] sm:$0x1] %vm421_vm5, %v391_v13  ;;  %v510_v30 = vld [vmem:[%s1109_s14 + $0xf] sm:$0x1] (%p1058_p13) }
  0xdd   : > { %453 = vst.msk [vmem:[%s1109_s14 + $0x1f] sm:$0x1] %vm421_vm5, %v392_v14  ;;  %v528_v39 = vld [vmem:[%s1109_s14 + $0x18] sm:$0x1] (%p1058_p13) }
  0xde   : > { %481 = vst [vmem:[%s1184_s17] sm:$0x1] %v480_v15  ;;  %v530_v40 = vld [vmem:[%s1109_s14 + $0x19] sm:$0x1] }
  0xdf   : > { %483 = vst [vmem:[%s1184_s17 + $0x8] sm:$0x1] %v482_v16  ;;  %v532_v41 = vld [vmem:[%s1109_s14 + $0x1a] sm:$0x1] }
  0xe0   : > { %485 = vst [vmem:[%s1184_s17 + $0x10] sm:$0x1] %v484_v17  ;;  %v534_v42 = vld [vmem:[%s1109_s14 + $0x1b] sm:$0x1] }
  0xe1   : > { %487 = vst [vmem:[%s1184_s17 + $0x18] sm:$0x1] %v486_v18  ;;  %v536_v43 = vld [vmem:[%s1109_s14 + $0x1c] sm:$0x1] }
  0xe2   : > { %489 = vst [vmem:[%s1184_s17 + $0x20] sm:$0x1] %v488_v19  ;;  %v538_v44 = vld [vmem:[%s1109_s14 + $0x1d] sm:$0x1] }
  0xe3   : > { %491 = vst [vmem:[%s1184_s17 + $0x28] sm:$0x1] %v490_v20  ;;  %v540_v45 = vld [vmem:[%s1109_s14 + $0x1e] sm:$0x1] }
  0xe4   : > { %493 = vst [vmem:[%s1184_s17 + $0x30] sm:$0x1] %v492_v21  ;;  %v542_v46 = vld [vmem:[%s1109_s14 + $0x1f] sm:$0x1] }
  0xe5   : > { %495 = vst [vmem:[%s1184_s17 + $0x38] sm:$0x1] %v494_v22 }
  0xe6   : > { %497 = vst [vmem:[%s1184_s17 + $0x40] sm:$0x1] %v496_v23 }
  0xe7   : > { %499 = vst [vmem:[%s1184_s17 + $0x48] sm:$0x1] %v498_v24 }
  0xe8   : > { %501 = vst [vmem:[%s1184_s17 + $0x50] sm:$0x1] %v500_v25 }
  0xe9   : > { %503 = vst [vmem:[%s1184_s17 + $0x58] sm:$0x1] %v502_v26 }
  0xea   : > { %505 = vst [vmem:[%s1184_s17 + $0x60] sm:$0x1] %v504_v27 }
  0xeb   : > { %507 = vst [vmem:[%s1184_s17 + $0x68] sm:$0x1] %v506_v28 }
  0xec   : > { %509 = vst [vmem:[%s1184_s17 + $0x70] sm:$0x1] %v508_v29 }
  0xed   : > { %511 = vst [vmem:[%s1184_s17 + $0x78] sm:$0x1] %v510_v30 }
  0xee   : > { %513 = vst [vmem:[%s1184_s17 + $0x80] sm:$0x1] %v512_v31 }
  0xef   : > { %515 = vst [vmem:[%s1184_s17 + $0x88] sm:$0x1] %v514_v32 }
  0xf0   : > { %517 = vst [vmem:[%s1184_s17 + $0x90] sm:$0x1] %v516_v33 }
  0xf1   : > { %519 = vst [vmem:[%s1184_s17 + $0x98] sm:$0x1] %v518_v34 }
  0xf2   : > { %521 = vst [vmem:[%s1184_s17 + $0xa0] sm:$0x1] %v520_v35 }
  0xf3   : > { %523 = vst [vmem:[%s1184_s17 + $0xa8] sm:$0x1] %v522_v36 }
  0xf4   : > { %525 = vst [vmem:[%s1184_s17 + $0xb0] sm:$0x1] %v524_v37 }
  0xf5   : > { %527 = vst [vmem:[%s1184_s17 + $0xb8] sm:$0x1] %v526_v38 }
  0xf6   : > { %529 = vst [vmem:[%s1184_s17 + $0xc0] sm:$0x1] %v528_v39 }
  0xf7   : > { %531 = vst [vmem:[%s1184_s17 + $0xc8] sm:$0x1] %v530_v40 }
  0xf8   : > { %533 = vst [vmem:[%s1184_s17 + $0xd0] sm:$0x1] %v532_v41 }
  0xf9   : > { %535 = vst [vmem:[%s1184_s17 + $0xd8] sm:$0x1] %v534_v42 }
  0xfa   : > { %537 = vst [vmem:[%s1184_s17 + $0xe0] sm:$0x1] %v536_v43 }
  0xfb   : > { %539 = vst [vmem:[%s1184_s17 + $0xe8] sm:$0x1] %v538_v44 }
  0xfc   : > { %541 = vst [vmem:[%s1184_s17 + $0xf0] sm:$0x1] %v540_v45 }
  0xfd   : > { %543 = vst [vmem:[%s1184_s17 + $0xf8] sm:$0x1] %v542_v46 }
  0xfe PF: > { %s17_s24 = sadd.s32 1, %s940_s24   ;;  %s1294_s20 = sld [smem:[#allocation10_spill]] }
  0xff   : > { %p14_p4 = scmp.ge.s32.totalorder %s17_s24, 18   ;;  %s1295_s21 = sld [smem:[#allocation6_spill]] }
 0x100   : > { %s1296_s19 = sld [smem:[#allocation9_spill]]  ;;  %s1299_s15 = smov %s908_s16 }
 0x101   : > { %s1297_s11 = sld [smem:[#allocation7_spill]]  ;;  %s1301_s17 = smov %s916_s18 }
 0x102   : > { %s1298_s29 = sld [smem:[#allocation8_spill]] }
 0x104   : > { %s1300_s16 = smov %s1294_s20  ;;  %s1303_s20 = smov %s932_s22 }
 0x105   : > { %s1302_s18 = smov %s1295_s21  ;;  %s1304_s21 = smov %s936_s23 }
 0x106   :  { %16 = sbr.rel (!%p14_p4) target bundleno = 6 (0x6), region = 117 }
 0x107   : > { %s1305_s22 = smov %s1297_s11 }
 0x108   : > { %s1306_s23 = smov %s1298_s29 }
 0x10b   :  { %641 = vsyncpa [#allocation3], 1 }
 0x10c   :  { %643 = vsyncpa [#allocation3 + $0x1], 1 }

</bundles_post_ra>
